<compile_context>
chip_gen: v6e
topology: v6e:2x2x1
jax: 0.10.0
libtpu: 0.0.40
codegen_flags: <defaults>
</compile_context>

<pallas_src>
import functools

import jax
import jax.numpy as jnp
from jax import lax
from jax.experimental import pallas as pl
from jax.experimental.pallas import tpu as pltpu


def _round_up(x, m):
    return ((x + m - 1) // m) * m


def _loss_kernel(label_ref, cls_ref, sem_ref, trans_ref, tmap_ref, out_ref,
                 *, batch_size):
    step = pl.program_id(0)

    @pl.when(step == 0)
    def _init():
        out_ref[...] = jnp.zeros_like(out_ref)

    label = label_ref[...]                          # (TB, 1) int32
    x = cls_ref[...].astype(jnp.float32)            # (TB, C)
    sem = sem_ref[...].astype(jnp.float32)          # (TB, C)
    tr = trans_ref[...].astype(jnp.float32)         # (TB, T)
    tmap = tmap_ref[...].astype(jnp.float32)        # (C, T)

    TB, C = x.shape
    T = tr.shape[1]

    # Valid-row mask (handles the zero-padded tail block, if any).
    row = lax.broadcasted_iota(jnp.int32, (TB, 1), 0)
    valid = ((step * TB + row) < batch_size).astype(jnp.float32)   # (TB, 1)

    # One-hot of label over the class axis; reused by every "gather by label".
    iota_c = lax.broadcasted_iota(jnp.int32, (TB, C), 1)
    onehot_c = (iota_c == label).astype(jnp.float32)                # (TB, C)

    # ---- L_cls partial: sum_i [logsumexp(x_i) - x_i[label_i]] ----
    m = jnp.max(x, axis=1, keepdims=True)                           # (TB, 1)
    lse = jnp.log(jnp.sum(jnp.exp(x - m), axis=1, keepdims=True)) + m
    x_at_label = jnp.sum(onehot_c * x, axis=1, keepdims=True)
    sum_cls = jnp.sum(valid * (lse - x_at_label))

    # ---- L_sem partial: sum_i [1 - logit_sem[i, label_i]] ----
    sem_at_label = jnp.sum(onehot_c * sem, axis=1, keepdims=True)
    sum_sem = jnp.sum(valid * (1.0 - sem_at_label))

    # ---- L_trans partial ----
    # Gather trans_map rows by label: (TB,C) @ (C,T). K/N are tiny but the MXU
    # slot is otherwise idle in this kernel, so the push is effectively free.
    mask = jnp.dot(onehot_c, tmap, preferred_element_type=jnp.float32)
    masked = tr * mask
    # argmax along dim 1 with first-occurrence tie-break (matches torch.argmax).
    maxv = jnp.max(masked, axis=1, keepdims=True)                   # (TB, 1)
    iota_t = lax.broadcasted_iota(jnp.int32, (TB, T), 1)
    first_idx = jnp.min(jnp.where(masked == maxv, iota_t, T), axis=1,
                        keepdims=True)
    onehot_t = (iota_t == first_idx).astype(jnp.float32)            # (TB, T)
    tr_at_label = jnp.sum(onehot_t * tr, axis=1, keepdims=True)
    sum_trans = jnp.sum(valid * (1.0 - tr_at_label))

    # Pack the three partial sums into one lane-dense row and accumulate into
    # the resident output block.
    lane = lax.broadcasted_iota(jnp.int32, (1, 128), 1)
    packed = (jnp.where(lane == 0, sum_cls, 0.0)
              + jnp.where(lane == 1, sum_sem, 0.0)
              + jnp.where(lane == 2, sum_trans, 0.0))
    out_ref[...] += packed

    @pl.when(step == pl.num_programs(0) - 1)
    def _finalize():
        out_ref[...] = out_ref[...] * (1.0 / batch_size)


def dgtl_loss(label, logit_cls, logit_sem, logit_trans, trans_map,
              *, block_rows=256):
    """Returns (L_cls, L_sem, L_trans) exactly as the PyTorch Loss.forward."""
    B, C = logit_cls.shape
    T = logit_trans.shape[1]

    # Batch tile: multiple of 32 rows (covers f32/bf16/int8 sublane packing),
    # capped at block_rows; pad the batch to a multiple of the tile.
    tb = _round_up(min(block_rows, _round_up(B, 32)), 32)
    b_pad = _round_up(B, tb)

    def pad_rows(a):
        if a.shape[0] == b_pad:
            return a
        return jnp.pad(a, ((0, b_pad - a.shape[0]), (0, 0)))

    label2d = pad_rows(label.astype(jnp.int32).reshape(B, 1))
    # NOTE: logits are passed in their native dtype; the kernel widens to f32.
    cls_p = pad_rows(logit_cls)
    sem_p = pad_rows(logit_sem)
    trans_p = pad_rows(logit_trans)

    grid = (b_pad // tb,)
    kernel = functools.partial(_loss_kernel, batch_size=B)

    out = pl.pallas_call(
        kernel,
        out_shape=jax.ShapeDtypeStruct((1, 128), jnp.float32),
        grid_spec=pltpu.PrefetchScalarGridSpec(
            num_scalar_prefetch=0,
            grid=grid,
            in_specs=[
                pl.BlockSpec((tb, 1), lambda i: (i, 0)),   # label
                pl.BlockSpec((tb, C), lambda i: (i, 0)),   # logit_cls
                pl.BlockSpec((tb, C), lambda i: (i, 0)),   # logit_sem
                pl.BlockSpec((tb, T), lambda i: (i, 0)),   # logit_trans
                pl.BlockSpec((C, T), lambda i: (0, 0)),    # trans_map (whole)
            ],
            out_specs=pl.BlockSpec((1, 128), lambda i: (0, 0)),
        ),
        compiler_params=pltpu.CompilerParams(
            dimension_semantics=("arbitrary",),   # batch axis is a reduction
            vmem_limit_bytes=32 * 1024 * 1024,
        ),
    )(label2d, cls_p, sem_p, trans_p, trans_map)

    return out[0, 0], out[0, 1], out[0, 2]


def _reference(label, logit_cls, logit_sem, logit_trans, trans_map):
    """Pure-JAX reference mirroring the PyTorch code, for sanity checking."""
    B = label.shape[0]
    logp = jax.nn.log_softmax(logit_cls.astype(jnp.float32), axis=1)
    L_cls = -jnp.mean(logp[jnp.arange(B), label])
    L_sem = jnp.mean(1.0 - logit_sem.astype(jnp.float32)[jnp.arange(B), label])
    idx = trans_map[label, :].astype(jnp.float32)
    tr = logit_trans.astype(jnp.float32)
    label_ = jnp.argmax(tr * idx, axis=1)
    L_trans = jnp.mean(1.0 - tr[jnp.arange(B), label_])
    return L_cls, L_sem, L_trans


if __name__ == "__main__":
    key = jax.random.PRNGKey(0)

    # ---- Test 1: small f32 problem, single grid step ----
    B, C, T = 8, 16, 32
    k_lab, k_cls, k_sem, k_tr, k_map = jax.random.split(key, 5)
    label = jax.random.randint(k_lab, (B,), 0, C, dtype=jnp.int32)
    logit_cls = jax.random.normal(k_cls, (B, C), dtype=jnp.float32)
    logit_sem = jax.nn.softmax(jax.random.normal(k_sem, (B, C)), axis=1)
    logit_trans = jax.random.normal(k_tr, (B, T), dtype=jnp.float32)
    trans_map = (jax.random.uniform(k_map, (C, T)) > 0.5).astype(jnp.float32)
    trans_map = trans_map.at[:, 0].set(1.0)

    out = dgtl_loss(label, logit_cls, logit_sem, logit_trans, trans_map)
    out = jax.block_until_ready(out)
    ref = _reference(label, logit_cls, logit_sem, logit_trans, trans_map)
    for got, exp in zip(out, ref):
        assert jnp.allclose(got, exp, atol=1e-5, rtol=1e-5), (got, exp)

    # ---- Test 2: bf16 inputs (no wrapper pre-cast), multi-step grid + padded
    #      tail (B=100, tile=32 -> grid of 4 with 28 masked pad rows) ----
    B2 = 100
    k_lab, k_cls, k_sem, k_tr = jax.random.split(jax.random.PRNGKey(1), 4)
    label2 = jax.random.randint(k_lab, (B2,), 0, C, dtype=jnp.int32)
    cls2 = jax.random.normal(k_cls, (B2, C), dtype=jnp.float32).astype(jnp.bfloat16)
    sem2 = jax.nn.softmax(jax.random.normal(k_sem, (B2, C)), axis=1).astype(jnp.bfloat16)
    tr2 = jax.random.normal(k_tr, (B2, T), dtype=jnp.float32).astype(jnp.bfloat16)

    out2 = dgtl_loss(label2, cls2, sem2, tr2, trans_map, block_rows=32)
    out2 = jax.block_until_ready(out2)
    ref2 = _reference(label2, cls2, sem2, tr2, trans_map)
    for got, exp in zip(out2, ref2):
        assert jnp.allclose(got, exp, atol=1e-5, rtol=1e-5), (got, exp)

    print("KERNEL_OK")
</pallas_src>

<mosaic_0001>
module attributes {stable_mosaic.version = 11 : i64} {
  func.func @_loss_kernel(%arg0: i32, %arg1: memref<32x1xi32, #tpu.memory_space<vmem>>, %arg2: memref<32x16xf32, #tpu.memory_space<vmem>>, %arg3: memref<32x16xf32, #tpu.memory_space<vmem>>, %arg4: memref<32x32xf32, #tpu.memory_space<vmem>>, %arg5: memref<16x32xf32, #tpu.memory_space<vmem>>, %arg6: memref<1x128xf32, #tpu.memory_space<vmem>>) attributes {dimension_semantics = [#tpu.dimension_semantics<arbitrary>], iteration_bounds = array<i64: 1>, scalar_prefetch = 0 : i64, scratch_operands = 0 : i64, tpu.core_type = #tpu.core_type<tc>, window_params = [{transform_indices = @transform_0, window_bounds = array<i64: 32, 1>}, {transform_indices = @transform_1, window_bounds = array<i64: 32, 16>}, {transform_indices = @transform_2, window_bounds = array<i64: 32, 16>}, {transform_indices = @transform_3, window_bounds = array<i64: 32, 32>}, {pipeline_mode = #tpu.pipeline_mode<synchronous>, transform_indices = @transform_4, window_bounds = array<i64: 16, 32>}, {pipeline_mode = #tpu.pipeline_mode<synchronous>, transform_indices = @transform_5, window_bounds = array<i64: 1, 128>}]} {
    %c0_i32 = arith.constant 0 : i32
    %0 = arith.cmpi eq, %arg0, %c0_i32 : i32
    %1 = arith.extui %0 : i1 to i32
    %c0_i32_0 = arith.constant 0 : i32
    %2 = arith.cmpi ne, %1, %c0_i32_0 : i32
    scf.if %2 {
      %cst_33 = arith.constant 0.000000e+00 : f32
      %98 = vector.broadcast %cst_33 : f32 to vector<1x128xf32>
      %c0_34 = arith.constant 0 : index
      %c0_35 = arith.constant 0 : index
      %99 = vector.load %arg6[%c0_34, %c0_35] : memref<1x128xf32, #tpu.memory_space<vmem>>, vector<1x128xf32>
      tpu.vector_store %arg6[%c0_34, %c0_35], %98 {strides = array<i32>} : memref<1x128xf32, #tpu.memory_space<vmem>>, vector<1x128xf32>,
    } else {
    }
    %c0 = arith.constant 0 : index
    %c0_1 = arith.constant 0 : index
    %3 = vector.load %arg1[%c0, %c0_1] : memref<32x1xi32, #tpu.memory_space<vmem>>, vector<32x1xi32>
    %c0_2 = arith.constant 0 : index
    %c0_3 = arith.constant 0 : index
    %4 = vector.load %arg2[%c0_2, %c0_3] : memref<32x16xf32, #tpu.memory_space<vmem>>, vector<32x16xf32>
    %c0_4 = arith.constant 0 : index
    %c0_5 = arith.constant 0 : index
    %5 = vector.load %arg3[%c0_4, %c0_5] : memref<32x16xf32, #tpu.memory_space<vmem>>, vector<32x16xf32>
    %c0_6 = arith.constant 0 : index
    %c0_7 = arith.constant 0 : index
    %6 = vector.load %arg4[%c0_6, %c0_7] : memref<32x32xf32, #tpu.memory_space<vmem>>, vector<32x32xf32>
    %c0_8 = arith.constant 0 : index
    %c0_9 = arith.constant 0 : index
    %7 = vector.load %arg5[%c0_8, %c0_9] : memref<16x32xf32, #tpu.memory_space<vmem>>, vector<16x32xf32>
    %8 = tpu.iota {dimensions = array<i32: 0>} : vector<32x1xi32>
    %c32_i32 = arith.constant 32 : i32
    %9 = arith.muli %arg0, %c32_i32 : i32
    %10 = vector.broadcast %9 : i32 to vector<32x1xi32>
    %11 = arith.addi %10, %8 : vector<32x1xi32>
    %c8_i32 = arith.constant 8 : i32
    %12 = vector.broadcast %c8_i32 : i32 to vector<32x1xi32>
    %13 = arith.cmpi slt, %11, %12 : vector<32x1xi32>
    %14 = arith.extui %13 : vector<32x1xi1> to vector<32x1xi32>
    %15 = arith.sitofp %14 : vector<32x1xi32> to vector<32x1xf32>
    %16 = tpu.iota {dimensions = array<i32: 1>} : vector<32x16xi32>
    %17 = vector.broadcast %3 : vector<32x1xi32> to vector<32x16xi32>
    %18 = arith.cmpi eq, %16, %17 : vector<32x16xi32>
    %19 = arith.extui %18 : vector<32x16xi1> to vector<32x16xi32>
    %20 = arith.sitofp %19 : vector<32x16xi32> to vector<32x16xf32>
    %cst = arith.constant dense<0xFF800000> : vector<32xf32>
    %21 = vector.multi_reduction <maximumf>, %4, %cst [1] : vector<32x16xf32> to vector<32xf32>
    %22 = vector.shape_cast %21 : vector<32xf32> to vector<32x1xf32>
    %23 = vector.broadcast %22 : vector<32x1xf32> to vector<32x16xf32>
    %24 = arith.subf %4, %23 : vector<32x16xf32>
    %25 = math.exp %24 : vector<32x16xf32>
    %cst_10 = arith.constant dense<0.000000e+00> : vector<32xf32>
    %26 = vector.multi_reduction <add>, %25, %cst_10 [1] : vector<32x16xf32> to vector<32xf32>
    %27 = vector.shape_cast %26 : vector<32xf32> to vector<32x1xf32>
    %28 = math.log %27 : vector<32x1xf32>
    %29 = arith.addf %28, %22 : vector<32x1xf32>
    %30 = arith.mulf %20, %4 : vector<32x16xf32>
    %cst_11 = arith.constant dense<0.000000e+00> : vector<32xf32>
    %31 = vector.multi_reduction <add>, %30, %cst_11 [1] : vector<32x16xf32> to vector<32xf32>
    %32 = vector.shape_cast %31 : vector<32xf32> to vector<32x1xf32>
    %33 = arith.subf %29, %32 : vector<32x1xf32>
    %34 = arith.mulf %15, %33 : vector<32x1xf32>
    %35 = vector.shape_cast %34 : vector<32x1xf32> to vector<1x32x1xf32>
    %cst_12 = arith.constant dense<0.000000e+00> : vector<1xf32>
    %36 = vector.multi_reduction <add>, %35, %cst_12 [1, 2] : vector<1x32x1xf32> to vector<1xf32>
    %37 = vector.shape_cast %36 : vector<1xf32> to vector<1x1x1xf32>
    %38 = vector.extract %37[0, 0, 0] : f32 from vector<1x1x1xf32>
    %39 = arith.mulf %20, %5 : vector<32x16xf32>
    %cst_13 = arith.constant dense<0.000000e+00> : vector<32xf32>
    %40 = vector.multi_reduction <add>, %39, %cst_13 [1] : vector<32x16xf32> to vector<32xf32>
    %41 = vector.shape_cast %40 : vector<32xf32> to vector<32x1xf32>
    %cst_14 = arith.constant 1.000000e+00 : f32
    %42 = vector.broadcast %cst_14 : f32 to vector<32x1xf32>
    %43 = arith.subf %42, %41 : vector<32x1xf32>
    %44 = arith.mulf %15, %43 : vector<32x1xf32>
    %45 = vector.shape_cast %44 : vector<32x1xf32> to vector<1x32x1xf32>
    %cst_15 = arith.constant dense<0.000000e+00> : vector<1xf32>
    %46 = vector.multi_reduction <add>, %45, %cst_15 [1, 2] : vector<1x32x1xf32> to vector<1xf32>
    %47 = vector.shape_cast %46 : vector<1xf32> to vector<1x1x1xf32>
    %48 = vector.extract %47[0, 0, 0] : f32 from vector<1x1x1xf32>
    %cst_16 = arith.constant dense<0.000000e+00> : vector<32x32xf32>
    %49 = tpu.matmul %20, %7, %cst_16 {dimension_numbers = #tpu.dot_dimension_numbers<[1], [0], [0], [1], [0, 0, 1, 1], [], []>} : vector<32x16xf32>, vector<16x32xf32>, vector<32x32xf32> -> vector<32x32xf32>
    %50 = arith.mulf %6, %49 : vector<32x32xf32>
    %cst_17 = arith.constant dense<0xFF800000> : vector<32xf32>
    %51 = vector.multi_reduction <maximumf>, %50, %cst_17 [1] : vector<32x32xf32> to vector<32xf32>
    %52 = vector.shape_cast %51 : vector<32xf32> to vector<32x1xf32>
    %53 = tpu.iota {dimensions = array<i32: 1>} : vector<32x32xi32>
    %54 = vector.broadcast %52 : vector<32x1xf32> to vector<32x32xf32>
    %55 = arith.cmpf oeq, %50, %54 : vector<32x32xf32>
    %c32_i32_18 = arith.constant 32 : i32
    %56 = vector.broadcast %c32_i32_18 : i32 to vector<32x32xi32>
    %57 = arith.select %55, %53, %56 : vector<32x32xi1>, vector<32x32xi32>
    %cst_19 = arith.constant dense<2147483647> : vector<32xi32>
    %58 = vector.multi_reduction <minsi>, %57, %cst_19 [1] : vector<32x32xi32> to vector<32xi32>
    %59 = vector.shape_cast %58 : vector<32xi32> to vector<32x1xi32>
    %60 = vector.broadcast %59 : vector<32x1xi32> to vector<32x32xi32>
    %61 = arith.cmpi eq, %53, %60 : vector<32x32xi32>
    %62 = arith.extui %61 : vector<32x32xi1> to vector<32x32xi32>
    %63 = arith.sitofp %62 : vector<32x32xi32> to vector<32x32xf32>
    %64 = arith.mulf %63, %6 : vector<32x32xf32>
    %cst_20 = arith.constant dense<0.000000e+00> : vector<32xf32>
    %65 = vector.multi_reduction <add>, %64, %cst_20 [1] : vector<32x32xf32> to vector<32xf32>
    %66 = vector.shape_cast %65 : vector<32xf32> to vector<32x1xf32>
    %cst_21 = arith.constant 1.000000e+00 : f32
    %67 = vector.broadcast %cst_21 : f32 to vector<32x1xf32>
    %68 = arith.subf %67, %66 : vector<32x1xf32>
    %69 = arith.mulf %15, %68 : vector<32x1xf32>
    %70 = vector.shape_cast %69 : vector<32x1xf32> to vector<1x32x1xf32>
    %cst_22 = arith.constant dense<0.000000e+00> : vector<1xf32>
    %71 = vector.multi_reduction <add>, %70, %cst_22 [1, 2] : vector<1x32x1xf32> to vector<1xf32>
    %72 = vector.shape_cast %71 : vector<1xf32> to vector<1x1x1xf32>
    %73 = vector.extract %72[0, 0, 0] : f32 from vector<1x1x1xf32>
    %74 = tpu.iota {dimensions = array<i32: 1>} : vector<1x128xi32>
    %c0_i32_23 = arith.constant 0 : i32
    %75 = vector.broadcast %c0_i32_23 : i32 to vector<1x128xi32>
    %76 = arith.cmpi eq, %74, %75 : vector<1x128xi32>
    %cst_24 = arith.constant 0.000000e+00 : f32
    %77 = vector.broadcast %38 : f32 to vector<1x128xf32>
    %78 = vector.broadcast %cst_24 : f32 to vector<1x128xf32>
    %79 = arith.select %76, %77, %78 : vector<1x128xi1>, vector<1x128xf32>
    %c1_i32 = arith.constant 1 : i32
    %80 = vector.broadcast %c1_i32 : i32 to vector<1x128xi32>
    %81 = arith.cmpi eq, %74, %80 : vector<1x128xi32>
    %cst_25 = arith.constant 0.000000e+00 : f32
    %82 = vector.broadcast %48 : f32 to vector<1x128xf32>
    %83 = vector.broadcast %cst_25 : f32 to vector<1x128xf32>
    %84 = arith.select %81, %82, %83 : vector<1x128xi1>, vector<1x128xf32>
    %85 = arith.addf %79, %84 : vector<1x128xf32>
    %c2_i32 = arith.constant 2 : i32
    %86 = vector.broadcast %c2_i32 : i32 to vector<1x128xi32>
    %87 = arith.cmpi eq, %74, %86 : vector<1x128xi32>
    %cst_26 = arith.constant 0.000000e+00 : f32
    %88 = vector.broadcast %73 : f32 to vector<1x128xf32>
    %89 = vector.broadcast %cst_26 : f32 to vector<1x128xf32>
    %90 = arith.select %87, %88, %89 : vector<1x128xi1>, vector<1x128xf32>
    %91 = arith.addf %85, %90 : vector<1x128xf32>
    %c0_27 = arith.constant 0 : index
    %c0_28 = arith.constant 0 : index
    %92 = vector.load %arg6[%c0_27, %c0_28] : memref<1x128xf32, #tpu.memory_space<vmem>>, vector<1x128xf32>
    %93 = arith.addf %92, %91 : vector<1x128xf32>
    %c0_29 = arith.constant 0 : index
    %c0_30 = arith.constant 0 : index
    %94 = vector.load %arg6[%c0_29, %c0_30] : memref<1x128xf32, #tpu.memory_space<vmem>>, vector<1x128xf32>
    tpu.vector_store %arg6[%c0_29, %c0_30], %93 {strides = array<i32>} : memref<1x128xf32, #tpu.memory_space<vmem>>, vector<1x128xf32>,
    %c0_i32_31 = arith.constant 0 : i32
    %95 = arith.cmpi eq, %arg0, %c0_i32_31 : i32
    %96 = arith.extui %95 : i1 to i32
    %c0_i32_32 = arith.constant 0 : i32
    %97 = arith.cmpi ne, %96, %c0_i32_32 : i32
    scf.if %97 {
      %c0_33 = arith.constant 0 : index
      %c0_34 = arith.constant 0 : index
      %98 = vector.load %arg6[%c0_33, %c0_34] : memref<1x128xf32, #tpu.memory_space<vmem>>, vector<1x128xf32>
      %cst_35 = arith.constant 1.250000e-01 : f32
      %99 = vector.broadcast %cst_35 : f32 to vector<1x128xf32>
      %100 = arith.mulf %98, %99 : vector<1x128xf32>
      %c0_36 = arith.constant 0 : index
      %c0_37 = arith.constant 0 : index
      %101 = vector.load %arg6[%c0_36, %c0_37] : memref<1x128xf32, #tpu.memory_space<vmem>>, vector<1x128xf32>
      tpu.vector_store %arg6[%c0_36, %c0_37], %100 {strides = array<i32>} : memref<1x128xf32, #tpu.memory_space<vmem>>, vector<1x128xf32>,
    } else {
    }
    return
  }
  func.func @transform_0(%arg0: i32) -> (i32, i32) {
    %c0_i32 = arith.constant 0 : i32
    %c0_i32_0 = arith.constant 0 : i32
    return %arg0, %c0_i32 : i32, i32
  }
  func.func @transform_1(%arg0: i32) -> (i32, i32) {
    %c0_i32 = arith.constant 0 : i32
    %c0_i32_0 = arith.constant 0 : i32
    return %arg0, %c0_i32 : i32, i32
  }
  func.func @transform_2(%arg0: i32) -> (i32, i32) {
    %c0_i32 = arith.constant 0 : i32
    %c0_i32_0 = arith.constant 0 : i32
    return %arg0, %c0_i32 : i32, i32
  }
  func.func @transform_3(%arg0: i32) -> (i32, i32) {
    %c0_i32 = arith.constant 0 : i32
    %c0_i32_0 = arith.constant 0 : i32
    return %arg0, %c0_i32 : i32, i32
  }
  func.func @transform_4(%arg0: i32) -> (i32, i32) {
    %c0_i32 = arith.constant 0 : i32
    %c0_i32_0 = arith.constant 0 : i32
    %c0_i32_1 = arith.constant 0 : i32
    return %c0_i32, %c0_i32_0 : i32, i32
  }
  func.func @transform_5(%arg0: i32) -> (i32, i32) {
    %c0_i32 = arith.constant 0 : i32
    %c0_i32_0 = arith.constant 0 : i32
    %c0_i32_1 = arith.constant 0 : i32
    return %c0_i32, %c0_i32_0 : i32, i32
  }
}

</mosaic_0001>

<bundles_post_ra>
// kernel: tpu_custom_call.1
= control target key start
LH: loop header
LB: loop body
LE: loop exit
PB: predicated region body
PF: predicated region fallthrough
CT: control target
= control target key end

     0   :  { %v572_v2 = vmov 0   ;;  %v573_v4 = vmov 0.0   ;;  %s820_s0 = inlined_call_operand.vmem [shape: s32[32,1], index: 0, kind: input, shape index: {}]   ;;  %s821_s1 = inlined_call_operand.vmem [shape: f32[32,16], index: 1, kind: input, shape index: {}]   ;;  %s822_s2 = inlined_call_operand.vmem [shape: f32[32,16], index: 2, kind: input, shape index: {}]   ;;  %s823_s3 = inlined_call_operand.vmem [shape: f32[32,32], index: 3, kind: input, shape index: {}]   ;;  %s824_s4 = inlined_call_operand.vmem [shape: f32[16,32], index: 4, kind: input, shape index: {}]   ;;  %s825_s5 = inlined_call_operand.hbm [shape: f32[1,128], index: 5, kind: output, shape index: {}]  }
   0x1   :  { %v27_v0 = vld [vmem:[%s820_s0 + $0x8] sm:$0xff]  ;;  %v26_v1 = vld [vmem:[%s820_s0] sm:$0xff]  ;;  %533 = vset.pattern.permute.xlu1 %v572_v2  ;;  %532 = vset.pattern.permute.xlu0 %v572_v2  ;;  %25 = vst [vmem:[#allocation2] sm:$0x1] %v573_v4  ;;  %v29_v6 = vld [vmem:[%s820_s0 + $0x18] sm:$0xff] }
   0x2   :  { %v43_v3 = vld [vmem:[%s824_s4 + $0x8] sm:$0xff]  ;;  %73 = vperm.xlu1 %533, %v27_v0   ;;  %70 = vperm.xlu0 %532, %v26_v1   ;;  %v42_v5 = vld [vmem:[%s824_s4] sm:$0xff]  ;;  %v28_v7 = vld [vmem:[%s820_s0 + $0x10] sm:$0xff] }
   0x3   :  { %509 = vmatprep.subr.mxu0 %v43_v3  ;;  %519 = vmatprep.subr.mxu1 %v43_v3 }
   0x4   :  { %510 = vmatpush3.msra.mxu0 %v43_v3  ;;  %521 = vmatpush3.msra.mxu1 %v43_v3 }
   0x5   :  { %10 = vsyncpa [#allocation3], 0  ;;  %511 = vmatprep.subr.mxu0 %v42_v5  ;;  %520 = vmatprep.subr.mxu1 %v42_v5  ;;  %v67_v8 = vlaneseq  ;;  %vm93_vm0 = vcmask 130048   ;;  %v653_v18 = vld [vmem:[%s823_s3 + $0x8] sm:$0xff]  ;;  %v658_v20 = vld [vmem:[%s823_s3] sm:$0xff]  ;;  %vm324_vm5 = vcmask 261120  }
   0x6   :  { %79 = vperm.xlu1 %533, %v29_v6   ;;  %76 = vperm.xlu0 %532, %v28_v7   ;;  %v666_v26 = vld [vmem:[%s823_s3 + $0x10] sm:$0xff]  ;;  %v672_v28 = vld [vmem:[%s823_s3 + $0x18] sm:$0xff]  ;;  %v689_v52 = vld [vmem:[%s821_s1 + $0x8] sm:$0xff]  ;;  %s574_s27 = smov [#allocation2]  }
   0x7   :  { %512 = vmatpush3.msra.mxu0 %v42_v5  ;;  %522 = vmatpush3.msra.mxu1 %v42_v5  ;;  %v624_v9 = vand.u32 127, %v67_v8  ;;  %v97_v54 = vsel %vm93_vm0, %v689_v52, -inf  ;;  %v696_v56 = vld [vmem:[%s821_s1 + $0x10] sm:$0xff]  ;;  %v701_v57 = vld [vmem:[%s821_s1] sm:$0xff]  ;;  %v710_v60 = vld [vmem:[%s821_s1 + $0x18] sm:$0xff]  ;;  %s483_s28 = sshll.u32 %s574_s27, 4  ;;  %s484_s28 = int_to_ptr.vmem [resolvable:$true] %s483_s28 }
   0x8   :  { %v100_v58 = vsel %vm93_vm0, %v696_v56, -inf  ;;  %v94_v59 = vsel %vm93_vm0, %v701_v57, -inf  ;;  %v103_v61 = vsel %vm93_vm0, %v710_v60, -inf  ;;  %s550_s29 = scalar_lea.vmem %s484_s28, 16  ;;  %s554_s0 = scalar_lea.vmem %s484_s28, 32 }
   0x9   :  { %p551_p0 = scmp.ne.s32.totalorder %s484_s28, %s550_s29  ;;  %p555_p1 = scmp.lt.s32.totalorder %s484_s28, %s484_s28 }
   0xa   :  { %p556_p2 = scmp.lt.s32.totalorder %s554_s0, %s550_s29 }
   0xc   :  { %p557_p3 = por %p556_p2, %p555_p1 }
   0xe   :  { %p558_p4 = pnand %p557_p3, %p551_p0 }
  0x7d   :  { %v74_v10 = vpop.permute.xlu1 %73  ;;  %v71_v11 = vpop.permute.xlu0 %70 }
  0x7e   :  { %vm82_vm1 = vcmp.eq.s32.totalorder %v624_v9, %v74_v10  ;;  %vm81_vm2 = vcmp.eq.s32.totalorder %v624_v9, %v71_v11 }
  0x7f   :  { %v629_v12 = vsel %vm82_vm1, 1.0, %v573_v4  ;;  %v632_v13 = vsel %vm81_vm2, 1.0, %v573_v4  ;;  %vm166_vm2 = vcmask 7168  }
  0x80   :  { %513 = vmatprep.mubr.msk.f32.mxu0 %vm93_vm0, %v632_v13 }
  0x81   :  { %v80_v14 = vpop.permute.xlu1 %79  ;;  %v77_v15 = vpop.permute.xlu0 %76  ;;  %514 = vmatmul.mubr.msk.f32.vlgmr.msra.gmra.mxu0 %vm93_vm0, %v629_v12 }
  0x82   :  { %vm84_vm3 = vcmp.eq.s32.totalorder %v624_v9, %v80_v14  ;;  %vm83_vm4 = vcmp.eq.s32.totalorder %v624_v9, %v77_v15 }
  0x83   :  { %v641_v16 = vsel %vm84_vm3, 1.0, %v573_v4  ;;  %v644_v17 = vsel %vm83_vm4, 1.0, %v573_v4  ;;  %vm457_vm3 = vcmp.eq.s32.totalorder %v624_v9, 0  ;;  %vm460_vm4 = vcmp.eq.s32.totalorder %v624_v9, 1 }
  0x84   :  { %516 = vmatprep.mubr.msk.f32.mxu1 %vm93_vm0, %v644_v17 }
  0x85   :  { %517 = vmatmul.mubr.msk.f32.vlgmr.msra.gmra.mxu1 %vm93_vm0, %v641_v16 }
 0x141   :  { %v515_v19 = vpop.f32.mrf.mxu0 }
 0x142   :  { %v321_v21 = vmul.f32 %v515_v19, %v653_v18 }
 0x143   :  { %v301_v22 = vpop.f32.mrf.mxu0 }
 0x144   :  { %v320_v23 = vmul.f32 %v301_v22, %v658_v20  ;;  %v328_v24 = vsel %vm324_vm5, %v321_v21, -inf }
 0x145   :  { %v518_v25 = vpop.f32.mrf.mxu1  ;;  %329 = vmax.xlane.f32.xlu0 %v328_v24 }
 0x146   :  { %v325_v27 = vsel %vm324_vm5, %v320_v23, -inf  ;;  %v323_v31 = vmul.f32 %v518_v25, %v672_v28 }
 0x147   :  { %v311_v29 = vpop.f32.mrf.mxu1  ;;  %326 = vmax.xlane.f32.xlu1 %v325_v27 }
 0x148   :  { %v322_v30 = vmul.f32 %v311_v29, %v666_v26  ;;  %v334_v33 = vsel %vm324_vm5, %v323_v31, -inf }
 0x14a   :  { %v331_v32 = vsel %vm324_vm5, %v322_v30, -inf }
 0x14b   :  { %332 = vmax.xlane.f32.xlu0 %v331_v32 }
 0x14f   :  { %335 = vmax.xlane.f32.xlu0 %v334_v33 }
 0x1ce   :  { %v330_v34 = vpop.xlane.xlu0 %329 }
 0x1cf   :  { %vm338_vm6 = vcmp.eq.f32.partialorder %v321_v21, %v330_v34 }
 0x1d0   :  { %v342_v35 = vsel %vm338_vm6, %v624_v9, 32  ;;  %v327_v36 = vpop.xlane.xlu1 %326 }
 0x1d1   :  { %v360_v37 = vsel %vm324_vm5, %v342_v35, 2147483647  ;;  %vm337_vm7 = vcmp.eq.f32.partialorder %v320_v23, %v327_v36 }
 0x1d2   :  { %v341_v38 = vsel %vm337_vm7, %v624_v9, 32  ;;  %v362_v39 = vshra.s32 %v360_v37, 16  ;;  %v361_v62 = vand.u32 65535, %v360_v37 }
 0x1d3   :  { %v345_v40 = vsel %vm324_vm5, %v341_v38, 2147483647 }
 0x1d4   :  { %v333_v41 = vpop.xlane.xlu0 %332  ;;  %v364_v42 = vcvt.s32.f32 %v362_v39  ;;  %v347_v43 = vshra.s32 %v345_v40, 16  ;;  %v346_v63 = vand.u32 65535, %v345_v40  ;;  %v363_v1 = vcvt.s32.f32 %v361_v62 }
 0x1d5   :  { %vm339_vm8 = vcmp.eq.f32.partialorder %v322_v30, %v333_v41 }
 0x1d6   :  { %v343_v44 = vsel %vm339_vm8, %v624_v9, 32  ;;  %365 = vmin.xlane.f32.xlu1 %v364_v42  ;;  %v349_v45 = vcvt.s32.f32 %v347_v43  ;;  %v348_v5 = vcvt.s32.f32 %v346_v63  ;;  %v35_v43 = vld [vmem:[%s822_s2 + $0x8] sm:$0xff] }
 0x1d7   :  { %v375_v46 = vsel %vm324_vm5, %v343_v44, 2147483647 }
 0x1d8   :  { %v336_v47 = vpop.xlane.xlu0 %335  ;;  %350 = vmin.xlane.f32.xlu0 %v349_v45  ;;  %v377_v48 = vshra.s32 %v375_v46, 16  ;;  %v376_v6 = vand.u32 65535, %v375_v46  ;;  %v184_v46 = vmul.f32 %v629_v12, %v35_v43 }
 0x1d9   :  { %vm340_vm9 = vcmp.eq.f32.partialorder %v323_v31, %v336_v47 }
 0x1da   :  { %v344_v49 = vsel %vm340_vm9, %v624_v9, 32  ;;  %v379_v50 = vcvt.s32.f32 %v377_v48  ;;  %v378_v10 = vcvt.s32.f32 %v376_v6  ;;  %v142_v48 = vmul.f32 %v632_v13, %v701_v57 }
 0x1db   :  { %v390_v51 = vsel %vm324_vm5, %v344_v49, 2147483647  ;;  %v34_v49 = vld [vmem:[%s822_s2] sm:$0xff] }
 0x1dc   :  { %380 = vmin.xlane.f32.xlu1 %v379_v50  ;;  %v392_v53 = vshra.s32 %v390_v51, 16  ;;  %v391_v11 = vand.u32 65535, %v390_v51  ;;  %v144_v51 = vmul.f32 %v644_v17, %v696_v56 }
 0x1de   :  { %v394_v55 = vcvt.s32.f32 %v392_v53  ;;  %v393_v21 = vcvt.s32.f32 %v391_v11  ;;  %v36_v53 = vld [vmem:[%s822_s2 + $0x10] sm:$0xff] }
 0x1e0   :  { %98 = vmax.xlane.f32.xlu1 %v97_v54  ;;  %395 = vmin.xlane.f32.xlu0 %v394_v55  ;;  %v37_v54 = vld [vmem:[%s822_s2 + $0x18] sm:$0xff] }
 0x1e4   :  { %101 = vmax.xlane.f32.xlu1 %v100_v58  ;;  %95 = vmax.xlane.f32.xlu0 %v94_v59  ;;  %v186_v58 = vmul.f32 %v641_v16, %v37_v54  ;;  %v145_v59 = vmul.f32 %v641_v16, %v710_v60 }
 0x1e6   :  { %v155_v62 = vsel %vm93_vm0, %v145_v59, 0.0 }
 0x1e8   :  { %104 = vmax.xlane.f32.xlu0 %v103_v61  ;;  %v196_v61 = vsel %vm93_vm0, %v186_v58, 0.0 }
 0x25f   :  { %v714_v0 = vpop.xlane.xlu1 %365 }
 0x260   :  { %vm367_vm10 = vcmp.eq.f32.partialorder %v364_v42, %v714_v0  ;;  %v143_v42 = vmul.f32 %v629_v12, %v689_v52  ;;  %v183_v12 = vmul.f32 %v632_v13, %v34_v49 }
 0x261   :  { %v717_v2 = vpop.xlane.xlu0 %350  ;;  %v368_v3 = vsel %vm367_vm10, %v363_v1, inf }
 0x262   :  { %369 = vmin.xlane.f32.xlu1 %v368_v3  ;;  %vm352_vm11 = vcmp.eq.f32.partialorder %v349_v45, %v717_v2  ;;  %v149_v47 = vsel %vm93_vm0, %v143_v42, 0.0  ;;  %v357_v63 = vcvt.f32.s32 %v717_v2 }
 0x263   :  { %v353_v7 = vsel %vm352_vm11, %v348_v5, inf }
 0x264   :  { %354 = vmin.xlane.f32.xlu0 %v353_v7 }
 0x265   :  { %v720_v8 = vpop.xlane.xlu1 %380 }
 0x266   :  { %vm382_vm12 = vcmp.eq.f32.partialorder %v379_v50, %v720_v8  ;;  %v190_v50 = vsel %vm93_vm0, %v184_v46, 0.0  ;;  %v387_v6 = vcvt.f32.s32 %v720_v8 }
 0x267   :  { %v383_v14 = vsel %vm382_vm12, %v378_v10, inf  ;;  %v358_v10 = vshll.u32 %v357_v63, 16 }
 0x268   :  { %384 = vmin.xlane.f32.xlu1 %v383_v14  ;;  %v388_v14 = vshll.u32 %v387_v6, 16 }
 0x269   :  { %v723_v15 = vpop.xlane.xlu0 %395  ;;  %v725_v19 = vpop.xlane.xlu1 %98 }
 0x26a   :  { %v107_v22 = vsub.f32 %v689_v52, %v725_v19  ;;  %vm397_vm13 = vcmp.eq.f32.partialorder %v394_v55, %v723_v15  ;;  %v146_v52 = vsel %vm93_vm0, %v142_v48, 0.0  ;;  %v152_v55 = vsel %vm93_vm0, %v144_v51, 0.0 }
 0x26b   :  { %v398_v23 = vsel %vm397_vm13, %v393_v21, inf }
 0x26c   :  { %v112_v24 = vmul.f32 1.442695, %v107_v22  ;;  %399 = vmin.xlane.f32.xlu0 %v398_v23 }
 0x26d   :  { %v730_v25 = vpop.xlane.xlu0 %95  ;;  %v732_v27 = vpop.xlane.xlu1 %101 }
 0x26e   :  { %534 = vpow2.f32 %v112_v24  ;;  %v106_v29 = vsub.f32 %v701_v57, %v730_v25  ;;  %v108_v30 = vsub.f32 %v696_v56, %v732_v27  ;;  %v185_v57 = vmul.f32 %v644_v17, %v36_v53 }
 0x26f   :  { %v187_v56 = vsel %vm93_vm0, %v183_v12, 0.0  ;;  %v372_v17 = vcvt.f32.s32 %v714_v0  ;;  %v402_v0 = vcvt.f32.s32 %v723_v15 }
 0x270   :  { %v110_v31 = vmul.f32 1.442695, %v106_v29  ;;  %v114_v32 = vmul.f32 1.442695, %v108_v30  ;;  %v193_v13 = vsel %vm93_vm0, %v185_v57, 0.0 }
 0x271   :  { %v738_v33 = vpop.xlane.xlu0 %104  ;;  %v373_v3 = vshll.u32 %v372_v17, 16 }
 0x272   :  { %536 = vpow2.f32 %v110_v31  ;;  %v109_v34 = vsub.f32 %v710_v60, %v738_v33 }
 0x273   :  { %538 = vpow2.f32 %v114_v32  ;;  %v403_v32 = vshll.u32 %v402_v0, 16 }
 0x274   :  { %v116_v35 = vmul.f32 1.442695, %v109_v34 }
 0x276   :  { %540 = vpow2.f32 %v116_v35 }
 0x27b   :  { %v535_v36 = vpop.eup %534 }
 0x27c   :  { %v121_v37 = vsel %vm93_vm0, %v535_v36, 0.0 }
 0x27d   :  { %122 = vadd.xlane.f32.xlu1 %v121_v37 }
 0x27f   :  { %v537_v38 = vpop.eup %536 }
 0x280   :  { %v539_v39 = vpop.eup %538  ;;  %v118_v40 = vsel %vm93_vm0, %v537_v38, 0.0 }
 0x281   :  { %119 = vadd.xlane.f32.xlu0 %v118_v40  ;;  %v124_v41 = vsel %vm93_vm0, %v539_v39, 0.0 }
 0x282   :  { %125 = vadd.xlane.f32.xlu1 %v124_v41 }
 0x283   :  { %v541_v44 = vpop.eup %540 }
 0x284   :  { %v127_v45 = vsel %vm93_vm0, %v541_v44, 0.0 }
 0x285   :  { %128 = vadd.xlane.f32.xlu0 %v127_v45 }
 0x286   :  { %150 = vadd.xlane.f32.xlu1 %v149_v47 }
 0x289   :  { %191 = vadd.xlane.f32.xlu0 %v190_v50 }
 0x28a   :  { %147 = vadd.xlane.f32.xlu1 %v146_v52 }
 0x28d   :  { %153 = vadd.xlane.f32.xlu0 %v152_v55 }
 0x28e   :  { %188 = vadd.xlane.f32.xlu1 %v187_v56 }
 0x291   :  { %194 = vadd.xlane.f32.xlu0 %v193_v13 }
 0x292   :  { %197 = vadd.xlane.f32.xlu1 %v196_v61 }
 0x295   :  { %156 = vadd.xlane.f32.xlu0 %v155_v62 }
 0x2eb   :  { %v370_v1 = vpop.xlane.xlu1 %369 }
 0x2ec   :  { %v371_v5 = vcvt.f32.s32 %v370_v1 }
 0x2ed   :  { %v355_v7 = vpop.xlane.xlu0 %354 }
 0x2ee   :  { %v374_v11 = vadd.s32 %v373_v3, %v371_v5  ;;  %v356_v16 = vcvt.f32.s32 %v355_v7 }
 0x2f0   :  { %v359_v60 = vadd.s32 %v358_v10, %v356_v16  ;;  %vm406_vm14 = vcmp.eq.s32.totalorder %v624_v9, %v374_v11 }
 0x2f1   :  { %v385_v21 = vpop.xlane.xlu1 %384  ;;  %v500_v22 = vsel %vm406_vm14, 1.0, %v573_v4 }
 0x2f2   :  { %v386_v23 = vcvt.f32.s32 %v385_v21  ;;  %v418_v2 = vmul.f32 %v500_v22, %v653_v18  ;;  %vm405_vm15 = vcmp.eq.s32.totalorder %v624_v9, %v359_v60 }
 0x2f3   :  { %v499_v8 = vsel %vm405_vm15, 1.0, %v573_v4 }
 0x2f4   :  { %v389_v24 = vadd.s32 %v388_v14, %v386_v23  ;;  %v424_v29 = vsel %vm324_vm5, %v418_v2, 0.0  ;;  %v417_v30 = vmul.f32 %v499_v8, %v658_v20 }
 0x2f5   :  { %v400_v31 = vpop.xlane.xlu0 %399  ;;  %425 = vadd.xlane.f32.xlu1 %v424_v29 }
 0x2f6   :  { %v401_v34 = vcvt.f32.s32 %v400_v31  ;;  %v421_v35 = vsel %vm324_vm5, %v417_v30, 0.0  ;;  %vm407_vm0 = vcmp.eq.s32.totalorder %v624_v9, %v389_v24 }
 0x2f7   :  { %422 = vadd.xlane.f32.xlu0 %v421_v35  ;;  %v501_v18 = vsel %vm407_vm0, 1.0, %v573_v4 }
 0x2f8   :  { %v404_v15 = vadd.s32 %v403_v32, %v401_v34  ;;  %v419_v36 = vmul.f32 %v501_v18, %v666_v26 }
 0x2fa   :  { %v427_v37 = vsel %vm324_vm5, %v419_v36, 0.0  ;;  %vm408_vm1 = vcmp.eq.s32.totalorder %v624_v9, %v404_v15 }
 0x2fb   :  { %428 = vadd.xlane.f32.xlu1 %v427_v37  ;;  %v502_v20 = vsel %vm408_vm1, 1.0, %v573_v4 }
 0x2fc   :  { %v420_v38 = vmul.f32 %v502_v20, %v672_v28 }
 0x2fe   :  { %v430_v39 = vsel %vm324_vm5, %v420_v38, 0.0  ;;  %vm464_vm5 = vcmp.eq.s32.totalorder %v624_v9, 2 }
 0x2ff   :  { %431 = vadd.xlane.f32.xlu0 %v430_v39 }
 0x306   :  { %v123_v40 = vpop.xlane.xlu1 %122 }
 0x307   :  { %542 = vlog2.f32 %v123_v40 }
 0x30a   :  { %v120_v41 = vpop.xlane.xlu0 %119 }
 0x30b   :  { %544 = vlog2.f32 %v120_v41  ;;  %v126_v42 = vpop.xlane.xlu1 %125 }
 0x30c   :  { %546 = vlog2.f32 %v126_v42 }
 0x30e   :  { %v129_v43 = vpop.xlane.xlu0 %128 }
 0x30f   :  { %548 = vlog2.f32 %v129_v43  ;;  %v151_v26 = vpop.xlane.xlu1 %150 }
 0x312   :  { %v192_v44 = vpop.xlane.xlu0 %191 }
 0x313   :  { %v148_v45 = vpop.xlane.xlu1 %147  ;;  %v200_v48 = vsub.f32 1.0, %v192_v44 }
 0x314   :  { %v543_v46 = vpop.eup %542 }
 0x315   :  { %v133_v47 = vmul.f32 0.6931472, %v543_v46  ;;  %v204_v54 = vmul.f32 0.0, %v200_v48 }
 0x316   :  { %v154_v4 = vpop.xlane.xlu0 %153 }
 0x317   :  { %v139_v28 = vadd.f32 %v133_v47, %v725_v19  ;;  %v189_v49 = vpop.xlane.xlu1 %188  ;;  %v208_v1 = vsel %vm166_vm2, %v204_v54, 0.0 }
 0x318   :  { %v545_v50 = vpop.eup %544  ;;  %v199_v51 = vsub.f32 1.0, %v189_v49 }
 0x319   :  { %v547_v52 = vpop.eup %546  ;;  %v131_v12 = vmul.f32 0.6931472, %v545_v50  ;;  %v159_v53 = vsub.f32 %v139_v28, %v151_v26 }
 0x31a   :  { %v135_v55 = vmul.f32 0.6931472, %v547_v52  ;;  %v195_v57 = vpop.xlane.xlu0 %194  ;;  %v207_v13 = vsel %vm166_vm2, %v199_v51, 0.0 }
 0x31b   :  { %v163_v56 = vmul.f32 0.0, %v159_v53  ;;  %v138_v58 = vadd.f32 %v131_v12, %v730_v25  ;;  %v201_v59 = vsub.f32 1.0, %v195_v57  ;;  %v198_v61 = vpop.xlane.xlu1 %197  ;;  %v209_v7 = vadd.f32 %v208_v1, %v207_v13 }
 0x31c   :  { %v549_v62 = vpop.eup %548  ;;  %v140_v19 = vadd.f32 %v135_v55, %v732_v27  ;;  %v202_v17 = vsub.f32 1.0, %v198_v61 }
 0x31d   :  { %v137_v63 = vmul.f32 0.6931472, %v549_v62  ;;  %v158_v3 = vsub.f32 %v138_v58, %v148_v45  ;;  %v205_v5 = vmul.f32 0.0, %v201_v59  ;;  %v168_v11 = vsel %vm166_vm2, %v163_v56, 0.0 }
 0x31e   :  { %v160_v6 = vsub.f32 %v140_v19, %v154_v4  ;;  %v206_v10 = vmul.f32 0.0, %v202_v17  ;;  %v157_v27 = vpop.xlane.xlu0 %156 }
 0x31f   :  { %v167_v25 = vsel %vm166_vm2, %v158_v3, 0.0  ;;  %v210_v16 = vsel %vm166_vm2, %v205_v5, 0.0  ;;  %v141_v60 = vadd.f32 %v137_v63, %v738_v33 }
 0x320   :  { %v169_v14 = vadd.f32 %v168_v11, %v167_v25  ;;  %v164_v21 = vmul.f32 0.0, %v160_v6  ;;  %v211_v22 = vadd.f32 %v210_v16, %v209_v7  ;;  %v212_v23 = vsel %vm166_vm2, %v206_v10, 0.0  ;;  %v468_v10 = vld [vmem:[#allocation2] sm:$0x1] }
 0x321   :  { %v161_v0 = vsub.f32 %v141_v60, %v157_v27 }
 0x322   :  { %v170_v2 = vsel %vm166_vm2, %v164_v21, 0.0  ;;  %v213_v8 = vadd.f32 %v212_v23, %v211_v22 }
 0x323   :  { %v165_v24 = vmul.f32 0.0, %v161_v0  ;;  %v171_v29 = vadd.f32 %v170_v2, %v169_v14 }
 0x324   :  { %214 = vadd.xlane.f32.xlu0 %v213_v8 }
 0x325   :  { %v172_v30 = vsel %vm166_vm2, %v165_v24, 0.0 }
 0x326   :  { %v173_v31 = vadd.f32 %v172_v30, %v171_v29 }
 0x328   :  { %174 = vadd.xlane.f32.xlu1 %v173_v31 }
 0x37e   :  { %v426_v32 = vpop.xlane.xlu1 %425 }
 0x37f   :  { %v434_v34 = vsub.f32 1.0, %v426_v32 }
 0x380   :  { %v423_v33 = vpop.xlane.xlu0 %422 }
 0x381   :  { %v438_v35 = vmul.f32 0.0, %v434_v34  ;;  %v433_v18 = vsub.f32 1.0, %v423_v33 }
 0x383   :  { %v442_v37 = vsel %vm166_vm2, %v438_v35, 0.0  ;;  %v441_v20 = vsel %vm166_vm2, %v433_v18, 0.0 }
 0x384   :  { %v429_v15 = vpop.xlane.xlu1 %428  ;;  %v443_v42 = vadd.f32 %v442_v37, %v441_v20 }
 0x385   :  { %v435_v36 = vsub.f32 1.0, %v429_v15 }
 0x387   :  { %v439_v38 = vmul.f32 0.0, %v435_v36 }
 0x388   :  { %v432_v39 = vpop.xlane.xlu0 %431 }
 0x389   :  { %v444_v40 = vsel %vm166_vm2, %v439_v38, 0.0  ;;  %v436_v41 = vsub.f32 1.0, %v432_v39 }
 0x38a   :  { %v445_v26 = vadd.f32 %v444_v40, %v443_v42 }
 0x38b   :  { %v440_v43 = vmul.f32 0.0, %v436_v41 }
 0x38d   :  { %v446_v44 = vsel %vm166_vm2, %v440_v43, 0.0 }
 0x38e   :  { %v447_v45 = vadd.f32 %v446_v44, %v445_v26 }
 0x390   :  { %448 = vadd.xlane.f32.xlu1 %v447_v45 }
 0x3ad   :  { %v215_v46 = vpop.xlane.xlu0 %214 }
 0x3ae   :  { %v216_v47 = vrot.slane %v215_v46, 4 }
 0x3b0   :  { %v217_v48 = vadd.f32 %v216_v47, %v215_v46 }
 0x3b1   :  { %v175_v4 = vpop.xlane.xlu1 %174 }
 0x3b2   :  { %v218_v28 = vrot.slane %v217_v48, 2  ;;  %v176_v49 = vrot.slane %v175_v4, 4 }
 0x3b4   :  { %v177_v50 = vadd.f32 %v176_v49, %v175_v4  ;;  %v219_v51 = vadd.f32 %v218_v28, %v217_v48 }
 0x3b6   :  { %v178_v52 = vrot.slane %v177_v50, 2  ;;  %v220_v53 = vrot.slane %v219_v51, 1 }
 0x3b8   :  { %v179_v12 = vadd.f32 %v178_v52, %v177_v50  ;;  %v221_v57 = vadd.f32 %v220_v53, %v219_v51 }
 0x3ba   :  { %v180_v54 = vrot.slane %v179_v12, 1 }
 0x3bc   :  { %v181_v55 = vadd.f32 %v180_v54, %v179_v12 }
 0x3be   :  { %523 = vpush %v181_v55 }
 0x3bf   :  { %525 = vpush %v221_v57 }
 0x3ef   :  { %s524_s2 = spop %523 }
 0x3f0   :  { %s526_s25 = spop %525  ;;  %v458_v17 = vstv %s524_s2 }
 0x3f1   :  { %v461_v63 = vstv %s526_s25  ;;  %v459_v1 = vsel %vm457_vm3, %v458_v17, 0.0 }
 0x3f2   :  { %v462_v3 = vsel %vm460_vm4, %v461_v63, 0.0 }
 0x3f3   :  { %v463_v5 = vadd.f32 %v462_v3, %v459_v1 }
 0x419   :  { %v449_v56 = vpop.xlane.xlu1 %448 }
 0x41a   :  { %v450_v58 = vrot.slane %v449_v56, 4 }
 0x41c   :  { %v451_v13 = vadd.f32 %v450_v58, %v449_v56 }
 0x41e   :  { %v452_v59 = vrot.slane %v451_v13, 2 }
 0x420   :  { %v453_v61 = vadd.f32 %v452_v59, %v451_v13 }
 0x422   :  { %v454_v62 = vrot.slane %v453_v61, 1 }
 0x424   :  { %v455_v19 = vadd.f32 %v454_v62, %v453_v61 }
 0x426   :  { %527 = vpush %v455_v19 }
 0x457   :  { %s528_s26 = spop %527 }
 0x458   :  { %v465_v6 = vstv %s528_s26 }
 0x459   :  { %v466_v7 = vsel %vm464_vm5, %v465_v6, 0.0 }
 0x45a   :  { %v467_v11 = vadd.f32 %v466_v7, %v463_v5 }
 0x45c   :  { %v469_v25 = vadd.f32 %v468_v10, %v467_v11 }
 0x45e   :  { %470 = vst [vmem:[#allocation2] sm:$0x1] %v469_v25 }
 0x465   :  { %v474_v16 = vld [vmem:[#allocation2] sm:$0x1] }
 0x466   :  { %v475_v60 = vmul.f32 0.125, %v474_v16 }
 0x468   :  { %476 = vst [vmem:[#allocation2] sm:$0x1] %v475_v60 }
 0x469   :  { %561 = shalt.err (!%p558_p4)
}
 0x46a   :  { %486 = dma.vmem_to_hbm [thread:$0]  %s484_s28, 16, %s825_s5, [#allocation3]  }
 0x46b   :  { %570 = dma.done.wait [#allocation3], 16  }
 0x46c   :  { %571 = vsyncadd [#allocation3], 4294967280 }
 0x46d   :  { %490 = vsyncpa [#allocation3], 1 }

</bundles_post_ra>
